<compile_context>
chip_gen: v6e
topology: v6e:2x2x1
jax: 0.10.0
libtpu: 0.0.40
codegen_flags: <defaults>
</compile_context>

<pallas_src>
import functools

import jax
import jax.numpy as jnp
from jax import lax
from jax.experimental import pallas as pl
from jax.experimental.pallas import tpu as pltpu


def lstm_kernel(ids_ref, embp_ref, whh_ref, wout_ref, bout_ref,
                out_ref, xg_sc, *, seq_len, batch_pad, hidden, vocab):
    """Single-invocation LSTM forward (whole problem resident in VMEM).

    ids_ref  : (T*Bp, 1) int32  time-major token ids (row = t*Bp + b)
    embp_ref : (V, 4H)   f32    emb_table @ W_ih^T + (b_ih+b_hh), gate order (i,f,o,g)
    whh_ref  : (H, 4H)          W_hh^T, gate order (i,f,o,g)
    wout_ref : (H, 128)         W_out^T zero-padded to 128 lanes
    bout_ref : (1, 128)  f32    b_out in lanes 0:2, -1e30 in pad lanes
    out_ref  : (Bp, 128) f32    padded log-probs (valid in [:, :2])
    xg_sc    : (T*Bp, 4H) f32   hoisted input projection scratch
    """
    T, Bp, H, V = seq_len, batch_pad, hidden, vocab

    # Fused embedding gather + input projection: ONE MXU matmul over all
    # timesteps.  one_hot(ids) @ (emb @ W_ih^T + bias) == x @ W_ih^T + bias.
    ids = ids_ref[...]                                              # (T*Bp, 1)
    vocab_iota = lax.broadcasted_iota(jnp.int32, (T * Bp, V), 1)    # lane iota
    onehot = (ids == vocab_iota).astype(jnp.float32)                # (T*Bp, V)
    xg_sc[...] = jnp.dot(onehot, embp_ref[...],
                         preferred_element_type=jnp.float32)        # (T*Bp, 4H)

    whh = whh_ref[...]
    w_dtype = whh.dtype

    def step(t, carry):
        h, c = carry
        row = pl.multiple_of(t * Bp, Bp)          # Bp is a multiple of 8: aligned
        g_x = xg_sc[pl.ds(row, Bp), :]            # (Bp, 4H) whole-tile load
        gates = g_x + jnp.dot(h.astype(w_dtype), whh,
                              preferred_element_type=jnp.float32)   # (Bp, 4H)
        # Gate order (i, f, o, g): sigmoid over one contiguous 3H slab,
        # tanh over the last H slab (half the EUP work of full-width both).
        sg = jax.nn.sigmoid(gates[:, 0:3 * H])
        g_g = jnp.tanh(gates[:, 3 * H:4 * H])
        i_g = sg[:, 0:H]
        f_g = sg[:, H:2 * H]
        o_g = sg[:, 2 * H:3 * H]
        c_new = f_g * c + i_g * g_g
        h_new = o_g * jnp.tanh(c_new)
        return h_new, c_new

    h0 = jnp.zeros((Bp, H), jnp.float32)
    c0 = jnp.zeros((Bp, H), jnp.float32)
    unroll = True if T <= 16 else 4               # bound vreg pressure for long T
    h_last, _ = lax.fori_loop(0, T, step, (h0, c0), unroll=unroll)

    # Lane-dense head: padded (H,128) weights; pad logits biased to -1e30 so a
    # full-width log_softmax equals the 2-class log_softmax in lanes 0:2.
    logits = (jnp.dot(h_last.astype(wout_ref.dtype), wout_ref[...],
                      preferred_element_type=jnp.float32)
              + bout_ref[...])                                      # (Bp, 128)
    m = jnp.max(logits, axis=1, keepdims=True)
    lse = jnp.log(jnp.sum(jnp.exp(logits - m), axis=1, keepdims=True)) + m
    out_ref[...] = logits - lse                   # unmasked 128-lane store


def lstm_forward(inputs, emb_table, w_ih, w_hh, b_ih, b_hh, w_out, b_out,
                 weight_dtype=jnp.float32):
    """inputs: (B, T) int32 token ids.  Returns (B, 2) float32 log-probs.

    weight_dtype=jnp.bfloat16 is recommended on v6e/v7x (bf16-native MXU);
    it affects the recurrent and head matmuls only; gate accumulation, the
    hoisted projection, and h/c state always stay f32 (expect looser
    agreement with an f32 reference in that mode).
    """
    B, T = inputs.shape
    V, _ = emb_table.shape
    H = w_hh.shape[1]
    Bp = max(8, ((B + 7) // 8) * 8)     # pad batch to a full f32 sublane tile
    NOUT = 128                          # lane-dense padded head width

    # Gate permutation: PyTorch column order (i, f, g, o) -> (i, f, o, g).
    def permute_gates(w):               # w: (..., 4H)
        return jnp.concatenate(
            [w[..., 0:H], w[..., H:2 * H], w[..., 3 * H:4 * H],
             w[..., 2 * H:3 * H]], axis=-1)

    wih_t = permute_gates(jnp.transpose(w_ih))                       # (E, 4H)
    whh_t = permute_gates(jnp.transpose(w_hh)).astype(weight_dtype)  # (H, 4H)
    bias = permute_gates((b_ih + b_hh).reshape(1, 4 * H)).astype(jnp.float32)

    # Fold gather into the kernel: precompute emb @ W_ih^T + bias once (tiny).
    emb_proj = (jnp.dot(emb_table.astype(jnp.float32), wih_t.astype(jnp.float32))
                + bias).astype(jnp.float32)                          # (V, 4H)

    # Time-major padded token ids (pad rows/cols use token 0; rows are
    # computed then discarded by the [:B] slice below).
    ids_tm = jnp.zeros((T, Bp), jnp.int32).at[:, :B].set(jnp.transpose(inputs))
    ids_tm = ids_tm.reshape(T * Bp, 1)

    # Lane-dense output head: W_out^T zero-padded to 128 lanes, pad biases
    # -1e30 so pad classes vanish from the in-kernel log_softmax.
    wout_pad = jnp.zeros((H, NOUT), weight_dtype).at[:, :2].set(
        jnp.transpose(w_out).astype(weight_dtype))
    bout_pad = jnp.full((1, NOUT), -1e30, jnp.float32).at[:, :2].set(
        b_out.astype(jnp.float32))

    kernel = functools.partial(lstm_kernel, seq_len=T, batch_pad=Bp,
                               hidden=H, vocab=V)

    # Grid-less single invocation: everything (a few tens of KiB here) stays
    # resident in VMEM; no per-step grid overhead or tiny per-step DMAs.
    # Scaling note: for large T*B*H, chunk the hoisted projection over time
    # blocks (grid over T-chunks) and, on v7x, add a "parallel" batch-group
    # axis to use both TensorCores.
    out = pl.pallas_call(
        kernel,
        out_shape=jax.ShapeDtypeStruct((Bp, NOUT), jnp.float32),
        in_specs=[pl.BlockSpec(memory_space=pltpu.MemorySpace.VMEM)] * 5,
        out_specs=pl.BlockSpec(memory_space=pltpu.MemorySpace.VMEM),
        scratch_shapes=[pltpu.VMEM((T * Bp, 4 * H), jnp.float32)],
        compiler_params=pltpu.CompilerParams(
            vmem_limit_bytes=32 * 1024 * 1024),
    )(ids_tm, emb_proj, whh_t, wout_pad, bout_pad)
    return out[:B, :2]


if __name__ == "__main__":
    # Small, deterministic configuration consistent with the module's forward.
    vocab_size = 16
    embedding_dim = 32
    hidden_dim = 32
    batch_size = 2
    seq_len = 8

    key = jax.random.PRNGKey(0)
    keys = jax.random.split(key, 8)
    k = 1.0 / jnp.sqrt(hidden_dim)

    emb_table = jax.random.normal(keys[0], (vocab_size, embedding_dim),
                                  dtype=jnp.float32)
    w_ih = jax.random.uniform(keys[1], (4 * hidden_dim, embedding_dim),
                              minval=-k, maxval=k, dtype=jnp.float32)
    w_hh = jax.random.uniform(keys[2], (4 * hidden_dim, hidden_dim),
                              minval=-k, maxval=k, dtype=jnp.float32)
    b_ih = jax.random.uniform(keys[3], (4 * hidden_dim,),
                              minval=-k, maxval=k, dtype=jnp.float32)
    b_hh = jax.random.uniform(keys[4], (4 * hidden_dim,),
                              minval=-k, maxval=k, dtype=jnp.float32)
    w_out = jax.random.uniform(keys[5], (2, hidden_dim),
                               minval=-k, maxval=k, dtype=jnp.float32)
    b_out = jax.random.uniform(keys[6], (2,),
                               minval=-k, maxval=k, dtype=jnp.float32)

    inputs = jax.random.randint(keys[7], (batch_size, seq_len), 0, vocab_size,
                                dtype=jnp.int32)

    out = lstm_forward(inputs, emb_table, w_ih, w_hh, b_ih, b_hh, w_out, b_out)
    out = jax.block_until_ready(out)

    # Pure-JAX reference of the same semantics (PyTorch gate order i,f,g,o).
    def ref_forward():
        x = jnp.take(emb_table, inputs, axis=0)            # (B, T, E)
        h = jnp.zeros((batch_size, hidden_dim), jnp.float32)
        c = jnp.zeros((batch_size, hidden_dim), jnp.float32)
        for t in range(seq_len):
            g = x[:, t, :] @ w_ih.T + h @ w_hh.T + b_ih + b_hh
            i = jax.nn.sigmoid(g[:, 0:hidden_dim])
            f = jax.nn.sigmoid(g[:, hidden_dim:2 * hidden_dim])
            gg = jnp.tanh(g[:, 2 * hidden_dim:3 * hidden_dim])
            o = jax.nn.sigmoid(g[:, 3 * hidden_dim:4 * hidden_dim])
            c = f * c + i * gg
            h = o * jnp.tanh(c)
        logits = h @ w_out.T + b_out
        return jax.nn.log_softmax(logits, axis=1)

    ref = ref_forward()
    assert out.shape == (batch_size, 2)
    assert jnp.allclose(out, ref, atol=1e-5, rtol=1e-5)
    print("KERNEL_OK")
</pallas_src>

<mosaic_0001>
module attributes {stable_mosaic.version = 11 : i64} {
  func.func @lstm_kernel(%arg0: memref<64x1xi32, #tpu.memory_space<vmem>>, %arg1: memref<16x128xf32, #tpu.memory_space<vmem>>, %arg2: memref<32x128xf32, #tpu.memory_space<vmem>>, %arg3: memref<32x128xf32, #tpu.memory_space<vmem>>, %arg4: memref<1x128xf32, #tpu.memory_space<vmem>>, %arg5: memref<8x128xf32, #tpu.memory_space<vmem>>, %arg6: memref<64x128xf32, #tpu.memory_space<vmem>>) attributes {dimension_semantics = [], scalar_prefetch = 0 : i64, scratch_operands = 1 : i64, tpu.core_type = #tpu.core_type<tc>} {
    %c0 = arith.constant 0 : index
    %c0_0 = arith.constant 0 : index
    %0 = vector.load %arg0[%c0, %c0_0] : memref<64x1xi32, #tpu.memory_space<vmem>>, vector<64x1xi32>
    %1 = tpu.iota {dimensions = array<i32: 1>} : vector<64x16xi32>
    %2 = vector.broadcast %0 : vector<64x1xi32> to vector<64x16xi32>
    %3 = arith.cmpi eq, %2, %1 : vector<64x16xi32>
    %4 = arith.extui %3 : vector<64x16xi1> to vector<64x16xi32>
    %5 = arith.sitofp %4 : vector<64x16xi32> to vector<64x16xf32>
    %c0_1 = arith.constant 0 : index
    %c0_2 = arith.constant 0 : index
    %6 = vector.load %arg1[%c0_1, %c0_2] : memref<16x128xf32, #tpu.memory_space<vmem>>, vector<16x128xf32>
    %cst = arith.constant dense<0.000000e+00> : vector<64x128xf32>
    %7 = tpu.matmul %5, %6, %cst {dimension_numbers = #tpu.dot_dimension_numbers<[1], [0], [0], [1], [0, 0, 1, 1], [], []>} : vector<64x16xf32>, vector<16x128xf32>, vector<64x128xf32> -> vector<64x128xf32>
    %c0_3 = arith.constant 0 : index
    %c0_4 = arith.constant 0 : index
    %8 = vector.load %arg6[%c0_3, %c0_4] : memref<64x128xf32, #tpu.memory_space<vmem>>, vector<64x128xf32>
    tpu.vector_store %arg6[%c0_3, %c0_4], %7 {strides = array<i32>} : memref<64x128xf32, #tpu.memory_space<vmem>>, vector<64x128xf32>,
    %c0_5 = arith.constant 0 : index
    %c0_6 = arith.constant 0 : index
    %9 = vector.load %arg2[%c0_5, %c0_6] : memref<32x128xf32, #tpu.memory_space<vmem>>, vector<32x128xf32>
    %cst_7 = arith.constant 0.000000e+00 : f32
    %10 = vector.broadcast %cst_7 : f32 to vector<8x32xf32>
    %cst_8 = arith.constant 0.000000e+00 : f32
    %11 = vector.broadcast %cst_8 : f32 to vector<8x32xf32>
    %c0_i32 = arith.constant 0 : i32
    %c8_i32 = arith.constant 8 : i32
    %12 = arith.muli %c0_i32, %c8_i32 : i32
    %13 = tpu.assume_multiple %12, 8 : i32
    %14 = arith.index_cast %13 : i32 to index
    %c0_9 = arith.constant 0 : index
    %15 = vector.load %arg6[%14, %c0_9] : memref<64x128xf32, #tpu.memory_space<vmem>>, vector<8x128xf32>
    %cst_10 = arith.constant dense<0.000000e+00> : vector<8x128xf32>
    %16 = tpu.matmul %10, %9, %cst_10 {dimension_numbers = #tpu.dot_dimension_numbers<[1], [0], [0], [1], [0, 0, 1, 1], [], []>} : vector<8x32xf32>, vector<32x128xf32>, vector<8x128xf32> -> vector<8x128xf32>
    %17 = arith.addf %15, %16 : vector<8x128xf32>
    %18 = vector.extract_strided_slice %17 {offsets = [0, 0], sizes = [8, 96], strides = [1, 1]} : vector<8x128xf32> to vector<8x96xf32>
    %19 = arith.negf %18 : vector<8x96xf32>
    %20 = math.exp %19 : vector<8x96xf32>
    %cst_11 = arith.constant 1.000000e+00 : f32
    %21 = vector.broadcast %cst_11 : f32 to vector<8x96xf32>
    %22 = arith.addf %21, %20 : vector<8x96xf32>
    %23 = arith.divf %21, %22 : vector<8x96xf32>
    %24 = vector.extract_strided_slice %17 {offsets = [0, 96], sizes = [8, 32], strides = [1, 1]} : vector<8x128xf32> to vector<8x32xf32>
    %25 = math.tanh %24 : vector<8x32xf32>
    %26 = vector.extract_strided_slice %23 {offsets = [0, 0], sizes = [8, 32], strides = [1, 1]} : vector<8x96xf32> to vector<8x32xf32>
    %27 = vector.extract_strided_slice %23 {offsets = [0, 32], sizes = [8, 32], strides = [1, 1]} : vector<8x96xf32> to vector<8x32xf32>
    %28 = vector.extract_strided_slice %23 {offsets = [0, 64], sizes = [8, 32], strides = [1, 1]} : vector<8x96xf32> to vector<8x32xf32>
    %29 = arith.mulf %27, %11 : vector<8x32xf32>
    %30 = arith.mulf %26, %25 : vector<8x32xf32>
    %31 = arith.addf %29, %30 : vector<8x32xf32>
    %32 = math.tanh %31 : vector<8x32xf32>
    %33 = arith.mulf %28, %32 : vector<8x32xf32>
    %c1_i32 = arith.constant 1 : i32
    %c8_i32_12 = arith.constant 8 : i32
    %34 = arith.muli %c1_i32, %c8_i32_12 : i32
    %35 = tpu.assume_multiple %34, 8 : i32
    %36 = arith.index_cast %35 : i32 to index
    %c0_13 = arith.constant 0 : index
    %37 = vector.load %arg6[%36, %c0_13] : memref<64x128xf32, #tpu.memory_space<vmem>>, vector<8x128xf32>
    %cst_14 = arith.constant dense<0.000000e+00> : vector<8x128xf32>
    %38 = tpu.matmul %33, %9, %cst_14 {dimension_numbers = #tpu.dot_dimension_numbers<[1], [0], [0], [1], [0, 0, 1, 1], [], []>} : vector<8x32xf32>, vector<32x128xf32>, vector<8x128xf32> -> vector<8x128xf32>
    %39 = arith.addf %37, %38 : vector<8x128xf32>
    %40 = vector.extract_strided_slice %39 {offsets = [0, 0], sizes = [8, 96], strides = [1, 1]} : vector<8x128xf32> to vector<8x96xf32>
    %41 = arith.negf %40 : vector<8x96xf32>
    %42 = math.exp %41 : vector<8x96xf32>
    %cst_15 = arith.constant 1.000000e+00 : f32
    %43 = vector.broadcast %cst_15 : f32 to vector<8x96xf32>
    %44 = arith.addf %43, %42 : vector<8x96xf32>
    %45 = arith.divf %43, %44 : vector<8x96xf32>
    %46 = vector.extract_strided_slice %39 {offsets = [0, 96], sizes = [8, 32], strides = [1, 1]} : vector<8x128xf32> to vector<8x32xf32>
    %47 = math.tanh %46 : vector<8x32xf32>
    %48 = vector.extract_strided_slice %45 {offsets = [0, 0], sizes = [8, 32], strides = [1, 1]} : vector<8x96xf32> to vector<8x32xf32>
    %49 = vector.extract_strided_slice %45 {offsets = [0, 32], sizes = [8, 32], strides = [1, 1]} : vector<8x96xf32> to vector<8x32xf32>
    %50 = vector.extract_strided_slice %45 {offsets = [0, 64], sizes = [8, 32], strides = [1, 1]} : vector<8x96xf32> to vector<8x32xf32>
    %51 = arith.mulf %49, %31 : vector<8x32xf32>
    %52 = arith.mulf %48, %47 : vector<8x32xf32>
    %53 = arith.addf %51, %52 : vector<8x32xf32>
    %54 = math.tanh %53 : vector<8x32xf32>
    %55 = arith.mulf %50, %54 : vector<8x32xf32>
    %c2_i32 = arith.constant 2 : i32
    %c8_i32_16 = arith.constant 8 : i32
    %56 = arith.muli %c2_i32, %c8_i32_16 : i32
    %57 = tpu.assume_multiple %56, 8 : i32
    %58 = arith.index_cast %57 : i32 to index
    %c0_17 = arith.constant 0 : index
    %59 = vector.load %arg6[%58, %c0_17] : memref<64x128xf32, #tpu.memory_space<vmem>>, vector<8x128xf32>
    %cst_18 = arith.constant dense<0.000000e+00> : vector<8x128xf32>
    %60 = tpu.matmul %55, %9, %cst_18 {dimension_numbers = #tpu.dot_dimension_numbers<[1], [0], [0], [1], [0, 0, 1, 1], [], []>} : vector<8x32xf32>, vector<32x128xf32>, vector<8x128xf32> -> vector<8x128xf32>
    %61 = arith.addf %59, %60 : vector<8x128xf32>
    %62 = vector.extract_strided_slice %61 {offsets = [0, 0], sizes = [8, 96], strides = [1, 1]} : vector<8x128xf32> to vector<8x96xf32>
    %63 = arith.negf %62 : vector<8x96xf32>
    %64 = math.exp %63 : vector<8x96xf32>
    %cst_19 = arith.constant 1.000000e+00 : f32
    %65 = vector.broadcast %cst_19 : f32 to vector<8x96xf32>
    %66 = arith.addf %65, %64 : vector<8x96xf32>
    %67 = arith.divf %65, %66 : vector<8x96xf32>
    %68 = vector.extract_strided_slice %61 {offsets = [0, 96], sizes = [8, 32], strides = [1, 1]} : vector<8x128xf32> to vector<8x32xf32>
    %69 = math.tanh %68 : vector<8x32xf32>
    %70 = vector.extract_strided_slice %67 {offsets = [0, 0], sizes = [8, 32], strides = [1, 1]} : vector<8x96xf32> to vector<8x32xf32>
    %71 = vector.extract_strided_slice %67 {offsets = [0, 32], sizes = [8, 32], strides = [1, 1]} : vector<8x96xf32> to vector<8x32xf32>
    %72 = vector.extract_strided_slice %67 {offsets = [0, 64], sizes = [8, 32], strides = [1, 1]} : vector<8x96xf32> to vector<8x32xf32>
    %73 = arith.mulf %71, %53 : vector<8x32xf32>
    %74 = arith.mulf %70, %69 : vector<8x32xf32>
    %75 = arith.addf %73, %74 : vector<8x32xf32>
    %76 = math.tanh %75 : vector<8x32xf32>
    %77 = arith.mulf %72, %76 : vector<8x32xf32>
    %c3_i32 = arith.constant 3 : i32
    %c8_i32_20 = arith.constant 8 : i32
    %78 = arith.muli %c3_i32, %c8_i32_20 : i32
    %79 = tpu.assume_multiple %78, 8 : i32
    %80 = arith.index_cast %79 : i32 to index
    %c0_21 = arith.constant 0 : index
    %81 = vector.load %arg6[%80, %c0_21] : memref<64x128xf32, #tpu.memory_space<vmem>>, vector<8x128xf32>
    %cst_22 = arith.constant dense<0.000000e+00> : vector<8x128xf32>
    %82 = tpu.matmul %77, %9, %cst_22 {dimension_numbers = #tpu.dot_dimension_numbers<[1], [0], [0], [1], [0, 0, 1, 1], [], []>} : vector<8x32xf32>, vector<32x128xf32>, vector<8x128xf32> -> vector<8x128xf32>
    %83 = arith.addf %81, %82 : vector<8x128xf32>
    %84 = vector.extract_strided_slice %83 {offsets = [0, 0], sizes = [8, 96], strides = [1, 1]} : vector<8x128xf32> to vector<8x96xf32>
    %85 = arith.negf %84 : vector<8x96xf32>
    %86 = math.exp %85 : vector<8x96xf32>
    %cst_23 = arith.constant 1.000000e+00 : f32
    %87 = vector.broadcast %cst_23 : f32 to vector<8x96xf32>
    %88 = arith.addf %87, %86 : vector<8x96xf32>
    %89 = arith.divf %87, %88 : vector<8x96xf32>
    %90 = vector.extract_strided_slice %83 {offsets = [0, 96], sizes = [8, 32], strides = [1, 1]} : vector<8x128xf32> to vector<8x32xf32>
    %91 = math.tanh %90 : vector<8x32xf32>
    %92 = vector.extract_strided_slice %89 {offsets = [0, 0], sizes = [8, 32], strides = [1, 1]} : vector<8x96xf32> to vector<8x32xf32>
    %93 = vector.extract_strided_slice %89 {offsets = [0, 32], sizes = [8, 32], strides = [1, 1]} : vector<8x96xf32> to vector<8x32xf32>
    %94 = vector.extract_strided_slice %89 {offsets = [0, 64], sizes = [8, 32], strides = [1, 1]} : vector<8x96xf32> to vector<8x32xf32>
    %95 = arith.mulf %93, %75 : vector<8x32xf32>
    %96 = arith.mulf %92, %91 : vector<8x32xf32>
    %97 = arith.addf %95, %96 : vector<8x32xf32>
    %98 = math.tanh %97 : vector<8x32xf32>
    %99 = arith.mulf %94, %98 : vector<8x32xf32>
    %c4_i32 = arith.constant 4 : i32
    %c8_i32_24 = arith.constant 8 : i32
    %100 = arith.muli %c4_i32, %c8_i32_24 : i32
    %101 = tpu.assume_multiple %100, 8 : i32
    %102 = arith.index_cast %101 : i32 to index
    %c0_25 = arith.constant 0 : index
    %103 = vector.load %arg6[%102, %c0_25] : memref<64x128xf32, #tpu.memory_space<vmem>>, vector<8x128xf32>
    %cst_26 = arith.constant dense<0.000000e+00> : vector<8x128xf32>
    %104 = tpu.matmul %99, %9, %cst_26 {dimension_numbers = #tpu.dot_dimension_numbers<[1], [0], [0], [1], [0, 0, 1, 1], [], []>} : vector<8x32xf32>, vector<32x128xf32>, vector<8x128xf32> -> vector<8x128xf32>
    %105 = arith.addf %103, %104 : vector<8x128xf32>
    %106 = vector.extract_strided_slice %105 {offsets = [0, 0], sizes = [8, 96], strides = [1, 1]} : vector<8x128xf32> to vector<8x96xf32>
    %107 = arith.negf %106 : vector<8x96xf32>
    %108 = math.exp %107 : vector<8x96xf32>
    %cst_27 = arith.constant 1.000000e+00 : f32
    %109 = vector.broadcast %cst_27 : f32 to vector<8x96xf32>
    %110 = arith.addf %109, %108 : vector<8x96xf32>
    %111 = arith.divf %109, %110 : vector<8x96xf32>
    %112 = vector.extract_strided_slice %105 {offsets = [0, 96], sizes = [8, 32], strides = [1, 1]} : vector<8x128xf32> to vector<8x32xf32>
    %113 = math.tanh %112 : vector<8x32xf32>
    %114 = vector.extract_strided_slice %111 {offsets = [0, 0], sizes = [8, 32], strides = [1, 1]} : vector<8x96xf32> to vector<8x32xf32>
    %115 = vector.extract_strided_slice %111 {offsets = [0, 32], sizes = [8, 32], strides = [1, 1]} : vector<8x96xf32> to vector<8x32xf32>
    %116 = vector.extract_strided_slice %111 {offsets = [0, 64], sizes = [8, 32], strides = [1, 1]} : vector<8x96xf32> to vector<8x32xf32>
    %117 = arith.mulf %115, %97 : vector<8x32xf32>
    %118 = arith.mulf %114, %113 : vector<8x32xf32>
    %119 = arith.addf %117, %118 : vector<8x32xf32>
    %120 = math.tanh %119 : vector<8x32xf32>
    %121 = arith.mulf %116, %120 : vector<8x32xf32>
    %c5_i32 = arith.constant 5 : i32
    %c8_i32_28 = arith.constant 8 : i32
    %122 = arith.muli %c5_i32, %c8_i32_28 : i32
    %123 = tpu.assume_multiple %122, 8 : i32
    %124 = arith.index_cast %123 : i32 to index
    %c0_29 = arith.constant 0 : index
    %125 = vector.load %arg6[%124, %c0_29] : memref<64x128xf32, #tpu.memory_space<vmem>>, vector<8x128xf32>
    %cst_30 = arith.constant dense<0.000000e+00> : vector<8x128xf32>
    %126 = tpu.matmul %121, %9, %cst_30 {dimension_numbers = #tpu.dot_dimension_numbers<[1], [0], [0], [1], [0, 0, 1, 1], [], []>} : vector<8x32xf32>, vector<32x128xf32>, vector<8x128xf32> -> vector<8x128xf32>
    %127 = arith.addf %125, %126 : vector<8x128xf32>
    %128 = vector.extract_strided_slice %127 {offsets = [0, 0], sizes = [8, 96], strides = [1, 1]} : vector<8x128xf32> to vector<8x96xf32>
    %129 = arith.negf %128 : vector<8x96xf32>
    %130 = math.exp %129 : vector<8x96xf32>
    %cst_31 = arith.constant 1.000000e+00 : f32
    %131 = vector.broadcast %cst_31 : f32 to vector<8x96xf32>
    %132 = arith.addf %131, %130 : vector<8x96xf32>
    %133 = arith.divf %131, %132 : vector<8x96xf32>
    %134 = vector.extract_strided_slice %127 {offsets = [0, 96], sizes = [8, 32], strides = [1, 1]} : vector<8x128xf32> to vector<8x32xf32>
    %135 = math.tanh %134 : vector<8x32xf32>
    %136 = vector.extract_strided_slice %133 {offsets = [0, 0], sizes = [8, 32], strides = [1, 1]} : vector<8x96xf32> to vector<8x32xf32>
    %137 = vector.extract_strided_slice %133 {offsets = [0, 32], sizes = [8, 32], strides = [1, 1]} : vector<8x96xf32> to vector<8x32xf32>
    %138 = vector.extract_strided_slice %133 {offsets = [0, 64], sizes = [8, 32], strides = [1, 1]} : vector<8x96xf32> to vector<8x32xf32>
    %139 = arith.mulf %137, %119 : vector<8x32xf32>
    %140 = arith.mulf %136, %135 : vector<8x32xf32>
    %141 = arith.addf %139, %140 : vector<8x32xf32>
    %142 = math.tanh %141 : vector<8x32xf32>
    %143 = arith.mulf %138, %142 : vector<8x32xf32>
    %c6_i32 = arith.constant 6 : i32
    %c8_i32_32 = arith.constant 8 : i32
    %144 = arith.muli %c6_i32, %c8_i32_32 : i32
    %145 = tpu.assume_multiple %144, 8 : i32
    %146 = arith.index_cast %145 : i32 to index
    %c0_33 = arith.constant 0 : index
    %147 = vector.load %arg6[%146, %c0_33] : memref<64x128xf32, #tpu.memory_space<vmem>>, vector<8x128xf32>
    %cst_34 = arith.constant dense<0.000000e+00> : vector<8x128xf32>
    %148 = tpu.matmul %143, %9, %cst_34 {dimension_numbers = #tpu.dot_dimension_numbers<[1], [0], [0], [1], [0, 0, 1, 1], [], []>} : vector<8x32xf32>, vector<32x128xf32>, vector<8x128xf32> -> vector<8x128xf32>
    %149 = arith.addf %147, %148 : vector<8x128xf32>
    %150 = vector.extract_strided_slice %149 {offsets = [0, 0], sizes = [8, 96], strides = [1, 1]} : vector<8x128xf32> to vector<8x96xf32>
    %151 = arith.negf %150 : vector<8x96xf32>
    %152 = math.exp %151 : vector<8x96xf32>
    %cst_35 = arith.constant 1.000000e+00 : f32
    %153 = vector.broadcast %cst_35 : f32 to vector<8x96xf32>
    %154 = arith.addf %153, %152 : vector<8x96xf32>
    %155 = arith.divf %153, %154 : vector<8x96xf32>
    %156 = vector.extract_strided_slice %149 {offsets = [0, 96], sizes = [8, 32], strides = [1, 1]} : vector<8x128xf32> to vector<8x32xf32>
    %157 = math.tanh %156 : vector<8x32xf32>
    %158 = vector.extract_strided_slice %155 {offsets = [0, 0], sizes = [8, 32], strides = [1, 1]} : vector<8x96xf32> to vector<8x32xf32>
    %159 = vector.extract_strided_slice %155 {offsets = [0, 32], sizes = [8, 32], strides = [1, 1]} : vector<8x96xf32> to vector<8x32xf32>
    %160 = vector.extract_strided_slice %155 {offsets = [0, 64], sizes = [8, 32], strides = [1, 1]} : vector<8x96xf32> to vector<8x32xf32>
    %161 = arith.mulf %159, %141 : vector<8x32xf32>
    %162 = arith.mulf %158, %157 : vector<8x32xf32>
    %163 = arith.addf %161, %162 : vector<8x32xf32>
    %164 = math.tanh %163 : vector<8x32xf32>
    %165 = arith.mulf %160, %164 : vector<8x32xf32>
    %c7_i32 = arith.constant 7 : i32
    %c8_i32_36 = arith.constant 8 : i32
    %166 = arith.muli %c7_i32, %c8_i32_36 : i32
    %167 = tpu.assume_multiple %166, 8 : i32
    %168 = arith.index_cast %167 : i32 to index
    %c0_37 = arith.constant 0 : index
    %169 = vector.load %arg6[%168, %c0_37] : memref<64x128xf32, #tpu.memory_space<vmem>>, vector<8x128xf32>
    %cst_38 = arith.constant dense<0.000000e+00> : vector<8x128xf32>
    %170 = tpu.matmul %165, %9, %cst_38 {dimension_numbers = #tpu.dot_dimension_numbers<[1], [0], [0], [1], [0, 0, 1, 1], [], []>} : vector<8x32xf32>, vector<32x128xf32>, vector<8x128xf32> -> vector<8x128xf32>
    %171 = arith.addf %169, %170 : vector<8x128xf32>
    %172 = vector.extract_strided_slice %171 {offsets = [0, 0], sizes = [8, 96], strides = [1, 1]} : vector<8x128xf32> to vector<8x96xf32>
    %173 = arith.negf %172 : vector<8x96xf32>
    %174 = math.exp %173 : vector<8x96xf32>
    %cst_39 = arith.constant 1.000000e+00 : f32
    %175 = vector.broadcast %cst_39 : f32 to vector<8x96xf32>
    %176 = arith.addf %175, %174 : vector<8x96xf32>
    %177 = arith.divf %175, %176 : vector<8x96xf32>
    %178 = vector.extract_strided_slice %171 {offsets = [0, 96], sizes = [8, 32], strides = [1, 1]} : vector<8x128xf32> to vector<8x32xf32>
    %179 = math.tanh %178 : vector<8x32xf32>
    %180 = vector.extract_strided_slice %177 {offsets = [0, 0], sizes = [8, 32], strides = [1, 1]} : vector<8x96xf32> to vector<8x32xf32>
    %181 = vector.extract_strided_slice %177 {offsets = [0, 32], sizes = [8, 32], strides = [1, 1]} : vector<8x96xf32> to vector<8x32xf32>
    %182 = vector.extract_strided_slice %177 {offsets = [0, 64], sizes = [8, 32], strides = [1, 1]} : vector<8x96xf32> to vector<8x32xf32>
    %183 = arith.mulf %181, %163 : vector<8x32xf32>
    %184 = arith.mulf %180, %179 : vector<8x32xf32>
    %185 = arith.addf %183, %184 : vector<8x32xf32>
    %186 = math.tanh %185 : vector<8x32xf32>
    %187 = arith.mulf %182, %186 : vector<8x32xf32>
    %c8_i32_40 = arith.constant 8 : i32
    %c0_41 = arith.constant 0 : index
    %c0_42 = arith.constant 0 : index
    %188 = vector.load %arg3[%c0_41, %c0_42] : memref<32x128xf32, #tpu.memory_space<vmem>>, vector<32x128xf32>
    %cst_43 = arith.constant dense<0.000000e+00> : vector<8x128xf32>
    %189 = tpu.matmul %187, %188, %cst_43 {dimension_numbers = #tpu.dot_dimension_numbers<[1], [0], [0], [1], [0, 0, 1, 1], [], []>} : vector<8x32xf32>, vector<32x128xf32>, vector<8x128xf32> -> vector<8x128xf32>
    %c0_44 = arith.constant 0 : index
    %c0_45 = arith.constant 0 : index
    %190 = vector.load %arg4[%c0_44, %c0_45] : memref<1x128xf32, #tpu.memory_space<vmem>>, vector<1x128xf32>
    %191 = vector.broadcast %190 : vector<1x128xf32> to vector<8x128xf32>
    %192 = arith.addf %189, %191 : vector<8x128xf32>
    %cst_46 = arith.constant dense<0xFF800000> : vector<8xf32>
    %193 = vector.multi_reduction <maximumf>, %192, %cst_46 [1] : vector<8x128xf32> to vector<8xf32>
    %194 = vector.shape_cast %193 : vector<8xf32> to vector<8x1xf32>
    %195 = vector.broadcast %194 : vector<8x1xf32> to vector<8x128xf32>
    %196 = arith.subf %192, %195 : vector<8x128xf32>
    %197 = math.exp %196 : vector<8x128xf32>
    %cst_47 = arith.constant dense<0.000000e+00> : vector<8xf32>
    %198 = vector.multi_reduction <add>, %197, %cst_47 [1] : vector<8x128xf32> to vector<8xf32>
    %199 = vector.shape_cast %198 : vector<8xf32> to vector<8x1xf32>
    %200 = math.log %199 : vector<8x1xf32>
    %201 = arith.addf %200, %194 : vector<8x1xf32>
    %202 = vector.broadcast %201 : vector<8x1xf32> to vector<8x128xf32>
    %203 = arith.subf %192, %202 : vector<8x128xf32>
    %c0_48 = arith.constant 0 : index
    %c0_49 = arith.constant 0 : index
    %204 = vector.load %arg5[%c0_48, %c0_49] : memref<8x128xf32, #tpu.memory_space<vmem>>, vector<8x128xf32>
    tpu.vector_store %arg5[%c0_48, %c0_49], %203 {strides = array<i32>} : memref<8x128xf32, #tpu.memory_space<vmem>>, vector<8x128xf32>,
    return
  }
}

</mosaic_0001>

<bundles_post_ra>
// kernel: tpu_custom_call.1
= control target key start
LH: loop header
LB: loop body
LE: loop exit
PB: predicated region body
PF: predicated region fallthrough
CT: control target
= control target key end

     0   :  { %10 = vsyncpa [#allocation4], 0  ;;  %s1763_s0 = inlined_call_operand.vmem [shape: s32[64,1], index: 0, kind: input, shape index: {}]   ;;  %s1764_s1 = inlined_call_operand.hbm [shape: f32[16,128], index: 1, kind: input, shape index: {}]   ;;  %s1765_s2 = inlined_call_operand.vmem [shape: f32[32,128], index: 2, kind: input, shape index: {}]   ;;  %s1766_s3 = inlined_call_operand.vmem [shape: f32[32,128], index: 3, kind: input, shape index: {}]   ;;  %s1767_s4 = inlined_call_operand.vmem [shape: f32[1,128], index: 4, kind: input, shape index: {}]   ;;  %s1768_s5 = inlined_call_operand.hbm [shape: f32[8,128], index: 5, kind: output, shape index: {}]  }
   0x1   :  { %11 = vsyncpa [#allocation5], 0  ;;  %s1490_s18 = smov [#allocation3]  }
   0x2   :  { %s19_s19 = sshll.u32 %s1490_s18, 4  ;;  %s20_s19 = int_to_ptr.vmem [resolvable:$true] %s19_s19 }
   0x3   :  { %s1454_s20 = scalar_lea.vmem %s20_s19, 256  ;;  %p1459_p1 = scmp.lt.s32.totalorder %s20_s19, %s20_s19 }
   0x4   :  { %p1455_p0 = scmp.ne.s32.totalorder %s20_s19, %s1454_s20  ;;  %p1460_p2 = scmp.lt.s32.totalorder %s1454_s20, %s1454_s20 }
   0x6   :  { %p1461_p3 = por %p1460_p2, %p1459_p1 }
   0x8   :  { %p1462_p4 = pnand %p1461_p3, %p1455_p0 }
   0xa   :  { %1465 = shalt.err (!%p1462_p4)
}
   0xb   :  { %s1491_s21 = smov 128   ;;  %s1492_s22 = smov 8  }
   0xc   :  { %25 = dma.hbm_to_vmem [thread:$0]  %s1764_s1, 256, %s20_s19, [#allocation4], %s1491_s21, %s1491_s21, %s1492_s22  }
   0xd   :  { %1486 = dma.done.wait [#allocation4], 256  }
   0xe   :  { %1487 = vsyncadd [#allocation4], 4294967040  ;;  %v1493_v0 = vmov 0   ;;  %v1494_v1 = vmov 0.0   ;;  %v35_v2 = vld [vmem:[%s1763_s0] sm:$0xff]  ;;  %v1539_v3 = vld [vmem:[%s1765_s2 + $0x18] sm:$0xff]  ;;  %v43_v10 = vlaneseq }
   0xf   :  { %1376 = vset.pattern.permute.xlu0 %v1493_v0  ;;  %1268 = vmatprep.subr.mxu1 %v1494_v1  ;;  %v1545_v4 = vld [vmem:[%s1765_s2 + $0x10] sm:$0xff]  ;;  %v94_v5 = vld [vmem:[#allocation3 + $0x8] sm:$0xff]  ;;  %v93_v8 = vld [vmem:[#allocation3] sm:$0xff]  ;;  %vm1495_vm0 = vmmov 0   ;;  %vm95_vm1 = vcmask 130048   ;;  %s1497_s11 = smov 64  }
  0x10   :  { %1377 = vset.pattern.permute.xlu1 %v1493_v0  ;;  %46 = vperm.xlu0 %1376, %v35_v2   ;;  %v36_v6 = vld [vmem:[%s1763_s0 + $0x8] sm:$0xff]  ;;  %v1561_v9 = vld [vmem:[%s1765_s2] sm:$0xff]  ;;  %v1581_v11 = vand.u32 127, %v43_v10  ;;  %vm238_vm4 = vcmask 261120   ;;  %v37_v45 = vld [vmem:[%s1763_s0 + $0x10] sm:$0xff] }
  0x11   :  { %1269 = vmatpush3.msra.mxu1 %v1539_v3  ;;  %1252 = vmatprep.subr.mxu0 %v94_v5  ;;  %v1554_v7 = vld [vmem:[%s1765_s2 + $0x8] sm:$0xff]  ;;  %s1496_s2 = smov 32   ;;  %v39_v46 = vld [vmem:[%s1763_s0 + $0x20] sm:$0xff]  ;;  %v41_v47 = vld [vmem:[%s1763_s0 + $0x30] sm:$0xff] }
  0x12   :  { %1270 = vmatprep.subr.mxu1 %v1494_v1  ;;  %1253 = vmatpush3.msra.mxu0 %v94_v5  ;;  %v38_v54 = vld [vmem:[%s1763_s0 + $0x18] sm:$0xff]  ;;  %v40_v55 = vld [vmem:[%s1763_s0 + $0x28] sm:$0xff] }
  0x13   :  { %1271 = vmatpush3.msra.mxu1 %v1545_v4  ;;  %1254 = vmatprep.subr.mxu0 %v93_v8  ;;  %v42_v56 = vld [vmem:[%s1763_s0 + $0x38] sm:$0xff] }
  0x14   :  { %1272 = vmatprep.subr.mxu1 %v1494_v1  ;;  %49 = vperm.xlu0 %1376, %v36_v6  }
  0x15   :  { %1273 = vmatpush3.msra.mxu1 %v1554_v7  ;;  %1255 = vmatpush3.msra.mxu0 %v93_v8 }
  0x16   :  { %1274 = vmatprep.subr.mxu1 %v1494_v1  ;;  %1276 = vmatprep.mubr.msk.f32.mxu1 %vm1495_vm0, %v1494_v1 }
  0x17   :  { %1275 = vmatpush3.msra.mxu1 %v1561_v9  ;;  %1290 = vmatprep.subr.mxu0 %v1494_v1 }
  0x18   :  { %1277 = vmatmul.mubr.f32.vlgmr.msra.gmra.mxu1 %v1494_v1  ;;  %1279 = vmatprep.subr.mxu1 %v1494_v1 }
  0x19   :  { %1280 = vmatpush3.msra.mxu1 %v1539_v3  ;;  %1287 = vmatprep.mubr.msk.f32.mxu1 %vm1495_vm0, %v1494_v1 }
  0x1a   :  { %1281 = vmatprep.subr.mxu1 %v1494_v1 }
  0x1b   :  { %1282 = vmatpush3.msra.mxu1 %v1545_v4 }
  0x1c   :  { %1283 = vmatprep.subr.mxu1 %v1494_v1 }
  0x1d   :  { %1284 = vmatpush3.msra.mxu1 %v1554_v7 }
  0x1e   :  { %1285 = vmatprep.subr.mxu1 %v1494_v1 }
  0x1f   :  { %1286 = vmatpush3.msra.mxu1 %v1561_v9 }
  0x20   :  { %1301 = vmatprep.subr.mxu1 %v1494_v1 }
  0x8b   :  { %v47_v12 = vpop.permute.xlu0 %46 }
  0x8c   :  { %vm69_vm2 = vcmp.eq.s32.totalorder %v47_v12, %v1581_v11 }
  0x8d   :  { %v1164_v13 = vsel %vm69_vm2, 1.0, %v1494_v1 }
  0x8e   :  { %1256 = vmatprep.mubr.msk.f32.mxu0 %vm95_vm1, %v1164_v13 }
  0x8f   :  { %v50_v14 = vpop.permute.xlu0 %49 }
  0x90   :  { %vm70_vm3 = vcmp.eq.s32.totalorder %v50_v14, %v1581_v11 }
  0x91   :  { %v1165_v15 = vsel %vm70_vm3, 1.0, %v1494_v1 }
  0x92   :  { %1257 = vmatmul.mubr.msk.f32.vlgmr.msra.gmra.mxu0 %vm95_vm1, %v1165_v15 }
  0x93   :  { %1291 = vmatpush3.msra.mxu0 %v1539_v3 }
  0x94   :  { %1292 = vmatprep.subr.mxu0 %v1494_v1 }
  0x95   :  { %1293 = vmatpush3.msra.mxu0 %v1545_v4 }
  0x96   :  { %1294 = vmatprep.subr.mxu0 %v1494_v1 }
  0x97   :  { %1295 = vmatpush3.msra.mxu0 %v1554_v7 }
  0x98   :  { %1296 = vmatprep.subr.mxu0 %v1494_v1 }
  0x99   :  { %1297 = vmatpush3.msra.mxu0 %v1561_v9 }
  0x9a   :  { %1312 = vmatprep.subr.mxu0 %v1494_v1 }
  0xd8   :  { %v308_v16 = vpop.f32.mrf.mxu1 }
  0xda   :  { %v1278_v17 = vpop.f32.mrf.mxu1 }
 0x152   :  { %v1258_v18 = vpop.f32.mrf.mxu0 }
 0x154   :  { %v186_v19 = vpop.f32.mrf.mxu0 }
 0x155   :  { %v312_v20 = vadd.f32 %v308_v16, %v186_v19 }
 0x157   :  { %1378 = vtanh.f32 %v312_v20  ;;  %v1180_v22 = vmul.f32 -1.442695, %v312_v20 }
 0x159   :  { %1380 = vpow2.f32 %v1180_v22 }
 0x164   :  { %v1379_v21 = vpop.eup %1378 }
 0x165   :  { %322 = vrot.lane.b32.xlu1 %v1379_v21, %s1496_s2 }
 0x166   :  { %v1381_v23 = vpop.eup %1380 }
 0x167   :  { %v316_v24 = vadd.f32 1.0, %v1381_v23 }
 0x169   :  { %1382 = vrcp.f32 %v316_v24 }
 0x176   :  { %v1383_v25 = vpop.eup %1382 }
 0x177   :  { %v320_v28 = vmul.f32 0.0, %v1383_v25 }
 0x1d7   :  { %v323_v26 = vpop.permute.xlu1 %322 }
 0x1d8   :  { %v325_v27 = vmul.f32 %v1383_v25, %v323_v26 }
 0x1da   :  { %327 = vrot.lane.b32.xlu1 %v325_v27, %s1496_s2 }
 0x24c   :  { %v328_v29 = vpop.permute.xlu1 %327 }
 0x24d   :  { %v330_v30 = vadd.f32 %v328_v29, %v320_v28 }
 0x24f   :  { %1384 = vtanh.f32 %v330_v30 }
 0x25c   :  { %v1385_v31 = vpop.eup %1384 }
 0x25d   :  { %333 = vrot.lane.b32.xlu0 %v1385_v31, %s1496_s2 }
 0x2cf   :  { %v334_v32 = vpop.permute.xlu0 %333 }
 0x2d0   :  { %v336_v33 = vmul.f32 %v1383_v25, %v334_v32 }
 0x2d2   :  { %340 = vrot.lane.b32.xlu1 %v336_v33, %s1497_s11 }
 0x344   :  { %v341_v34 = vpop.permute.xlu1 %340 }
 0x345   :  { %1288 = vmatmul.mubr.msk.f32.vlgmr.msra.gmra.mxu1 %vm238_vm4, %v341_v34 }
 0x346   :  { %1302 = vmatpush3.msra.mxu1 %v1539_v3  ;;  %1309 = vmatprep.mubr.msk.f32.mxu1 %vm1495_vm0, %v1494_v1 }
 0x347   :  { %1303 = vmatprep.subr.mxu1 %v1494_v1 }
 0x348   :  { %1304 = vmatpush3.msra.mxu1 %v1545_v4 }
 0x349   :  { %1305 = vmatprep.subr.mxu1 %v1494_v1 }
 0x34a   :  { %1306 = vmatpush3.msra.mxu1 %v1554_v7 }
 0x34b   :  { %1307 = vmatprep.subr.mxu1 %v1494_v1 }
 0x34c   :  { %1308 = vmatpush3.msra.mxu1 %v1561_v9 }
 0x34d   :  { %1323 = vmatprep.subr.mxu1 %v1494_v1 }
 0x405   :  { %v410_v35 = vpop.f32.mrf.mxu1 }
 0x406   :  { %v414_v36 = vadd.f32 %v1258_v18, %v410_v35 }
 0x407   :  { %v1289_v37 = vpop.f32.mrf.mxu1 }
 0x408   :  { %1386 = vtanh.f32 %v414_v36  ;;  %v1182_v39 = vmul.f32 -1.442695, %v414_v36 }
 0x40a   :  { %1388 = vpow2.f32 %v1182_v39 }
 0x415   :  { %v1387_v38 = vpop.eup %1386 }
 0x416   :  { %424 = vrot.lane.b32.xlu0 %v1387_v38, %s1496_s2 }
 0x417   :  { %v1389_v40 = vpop.eup %1388 }
 0x418   :  { %v418_v41 = vadd.f32 1.0, %v1389_v40 }
 0x41a   :  { %1390 = vrcp.f32 %v418_v41 }
 0x427   :  { %v1391_v42 = vpop.eup %1390 }
 0x428   :  { %v422_v48 = vmul.f32 %v1391_v42, %v330_v30 }
 0x488   :  { %v425_v43 = vpop.permute.xlu0 %424 }
 0x489   :  { %v427_v44 = vmul.f32 %v1391_v42, %v425_v43 }
 0x48b   :  { %429 = vrot.lane.b32.xlu1 %v427_v44, %s1496_s2 }
 0x48f   :  { %52 = vperm.xlu1 %1377, %v37_v45  }
 0x493   :  { %58 = vperm.xlu1 %1377, %v39_v46  }
 0x497   :  { %64 = vperm.xlu1 %1377, %v41_v47  }
 0x4fd   :  { %v430_v49 = vpop.permute.xlu1 %429 }
 0x4fe   :  { %v1623_v50 = vadd.f32 %v430_v49, %v422_v48 }
 0x500   :  { %1392 = vtanh.f32 %v1623_v50 }
 0x50a   :  { %v53_v51 = vpop.permute.xlu1 %52 }
 0x50b   :  { %vm71_vm5 = vcmp.eq.s32.totalorder %v53_v51, %v1581_v11 }
 0x50c   :  { %v1166_v52 = vsel %vm71_vm5, 1.0, %v1494_v1 }
 0x50d   :  { %v1393_v53 = vpop.eup %1392  ;;  %1259 = vmatprep.mubr.msk.f32.mxu0 %vm95_vm1, %v1166_v52 }
 0x50e   :  { %435 = vrot.lane.b32.xlu0 %v1393_v53, %s1496_s2  ;;  %v59_v59 = vpop.permute.xlu1 %58 }
 0x50f   :  { %vm73_vm6 = vcmp.eq.s32.totalorder %v59_v59, %v1581_v11 }
 0x510   :  { %v1168_v62 = vsel %vm73_vm6, 1.0, %v1494_v1 }
 0x512   :  { %55 = vperm.xlu0 %1376, %v38_v54   ;;  %v65_v60 = vpop.permute.xlu1 %64 }
 0x513   :  { %vm75_vm8 = vcmp.eq.s32.totalorder %v65_v60, %v1581_v11 }
 0x514   :  { %v1170_v2 = vsel %vm75_vm8, 1.0, %v1494_v1 }
 0x516   :  { %61 = vperm.xlu0 %1376, %v40_v55  }
 0x51a   :  { %67 = vperm.xlu0 %1376, %v42_v56  }
 0x580   :  { %v436_v57 = vpop.permute.xlu0 %435 }
 0x581   :  { %v438_v58 = vmul.f32 %v1391_v42, %v436_v57 }
 0x583   :  { %442 = vrot.lane.b32.xlu1 %v438_v58, %s1497_s11 }
 0x58d   :  { %v56_v61 = vpop.permute.xlu0 %55 }
 0x58e   :  { %vm72_vm7 = vcmp.eq.s32.totalorder %v56_v61, %v1581_v11 }
 0x58f   :  { %v1167_v63 = vsel %vm72_vm7, 1.0, %v1494_v1 }
 0x590   :  { %1260 = vmatmul.mubr.msk.f32.gmra.mxu0 %vm95_vm1, %v1167_v63 }
 0x591   :  { %v62_v0 = vpop.permute.xlu0 %61  ;;  %1262 = vmatprep.mubr.msk.f32.mxu0 %vm95_vm1, %v1168_v62 }
 0x592   :  { %vm74_vm9 = vcmp.eq.s32.totalorder %v62_v0, %v1581_v11 }
 0x593   :  { %v1169_v5 = vsel %vm74_vm9, 1.0, %v1494_v1 }
 0x594   :  { %1263 = vmatmul.mubr.msk.f32.gmra.mxu0 %vm95_vm1, %v1169_v5 }
 0x595   :  { %v68_v6 = vpop.permute.xlu0 %67  ;;  %1265 = vmatprep.mubr.msk.f32.mxu0 %vm95_vm1, %v1170_v2 }
 0x596   :  { %vm76_vm10 = vcmp.eq.s32.totalorder %v68_v6, %v1581_v11 }
 0x597   :  { %v1171_v8 = vsel %vm76_vm10, 1.0, %v1494_v1 }
 0x598   :  { %1266 = vmatmul.mubr.msk.f32.gmra.mxu0 %vm95_vm1, %v1171_v8 }
 0x599   :  { %1298 = vmatprep.mubr.msk.f32.mxu0 %vm1495_vm0, %v1494_v1 }
 0x5f5   :  { %v443_v10 = vpop.permute.xlu1 %442 }
 0x5f6   :  { %1299 = vmatmul.mubr.msk.f32.vlgmr.msra.gmra.mxu0 %vm238_vm4, %v443_v10 }
 0x5f7   :  { %1313 = vmatpush3.msra.mxu0 %v1539_v3  ;;  %1320 = vmatprep.mubr.msk.f32.mxu0 %vm1495_vm0, %v1494_v1 }
 0x5f8   :  { %1314 = vmatprep.subr.mxu0 %v1494_v1 }
 0x5f9   :  { %1315 = vmatpush3.msra.mxu0 %v1545_v4 }
 0x5fa   :  { %1316 = vmatprep.subr.mxu0 %v1494_v1 }
 0x5fb   :  { %1317 = vmatpush3.msra.mxu0 %v1554_v7 }
 0x5fc   :  { %1318 = vmatprep.subr.mxu0 %v1494_v1 }
 0x5fd   :  { %1319 = vmatpush3.msra.mxu0 %v1561_v9 }
 0x5fe   :  { %1334 = vmatprep.subr.mxu0 %v1494_v1 }
 0x650   :  { %v1261_v11 = vpop.f32.mrf.mxu0 }
 0x652   :  { %v196_v12 = vpop.f32.mrf.mxu0 }
 0x654   :  { %v1668_v13 = vpop.f32.mrf.mxu0 }
 0x656   :  { %v1670_v14 = vpop.f32.mrf.mxu0 }
 0x658   :  { %v1672_v15 = vpop.f32.mrf.mxu0 }
 0x65a   :  { %v1674_v16 = vpop.f32.mrf.mxu0 }
 0x6b6   :  { %v512_v17 = vpop.f32.mrf.mxu0 }
 0x6b7   :  { %v516_v18 = vadd.f32 %v512_v17, %v196_v12 }
 0x6b8   :  { %v1300_v19 = vpop.f32.mrf.mxu0 }
 0x6b9   :  { %1394 = vtanh.f32 %v516_v18  ;;  %v1184_v21 = vmul.f32 -1.442695, %v516_v18 }
 0x6bb   :  { %1396 = vpow2.f32 %v1184_v21 }
 0x6c6   :  { %v1395_v20 = vpop.eup %1394 }
 0x6c7   :  { %526 = vrot.lane.b32.xlu0 %v1395_v20, %s1496_s2 }
 0x6c8   :  { %v1397_v22 = vpop.eup %1396 }
 0x6c9   :  { %v520_v23 = vadd.f32 1.0, %v1397_v22 }
 0x6cb   :  { %1398 = vrcp.f32 %v520_v23 }
 0x6d8   :  { %v1399_v24 = vpop.eup %1398 }
 0x6d9   :  { %v524_v27 = vmul.f32 %v1399_v24, %v1623_v50 }
 0x739   :  { %v527_v25 = vpop.permute.xlu0 %526 }
 0x73a   :  { %v529_v26 = vmul.f32 %v1399_v24, %v527_v25 }
 0x73c   :  { %531 = vrot.lane.b32.xlu1 %v529_v26, %s1496_s2 }
 0x7ae   :  { %v532_v28 = vpop.permute.xlu1 %531 }
 0x7af   :  { %v534_v29 = vadd.f32 %v532_v28, %v524_v27 }
 0x7b1   :  { %1400 = vtanh.f32 %v534_v29 }
 0x7be   :  { %v1401_v30 = vpop.eup %1400 }
 0x7bf   :  { %537 = vrot.lane.b32.xlu0 %v1401_v30, %s1496_s2 }
 0x831   :  { %v538_v31 = vpop.permute.xlu0 %537 }
 0x832   :  { %v540_v32 = vmul.f32 %v1399_v24, %v538_v31 }
 0x834   :  { %544 = vrot.lane.b32.xlu1 %v540_v32, %s1497_s11 }
 0x8a6   :  { %v545_v33 = vpop.permute.xlu1 %544 }
 0x8a7   :  { %1310 = vmatmul.mubr.msk.f32.vlgmr.msra.gmra.mxu1 %vm238_vm4, %v545_v33 }
 0x8a8   :  { %1324 = vmatpush3.msra.mxu1 %v1539_v3  ;;  %1331 = vmatprep.mubr.msk.f32.mxu1 %vm1495_vm0, %v1494_v1 }
 0x8a9   :  { %1325 = vmatprep.subr.mxu1 %v1494_v1 }
 0x8aa   :  { %1326 = vmatpush3.msra.mxu1 %v1545_v4 }
 0x8ab   :  { %1327 = vmatprep.subr.mxu1 %v1494_v1 }
 0x8ac   :  { %1328 = vmatpush3.msra.mxu1 %v1554_v7 }
 0x8ad   :  { %1329 = vmatprep.subr.mxu1 %v1494_v1 }
 0x8ae   :  { %1330 = vmatpush3.msra.mxu1 %v1561_v9 }
 0x8af   :  { %1345 = vmatprep.subr.mxu1 %v1494_v1 }
 0x967   :  { %v614_v34 = vpop.f32.mrf.mxu1 }
 0x968   :  { %v618_v35 = vadd.f32 %v1261_v11, %v614_v34 }
 0x969   :  { %v1311_v36 = vpop.f32.mrf.mxu1 }
 0x96a   :  { %1402 = vtanh.f32 %v618_v35  ;;  %v1186_v38 = vmul.f32 -1.442695, %v618_v35 }
 0x96c   :  { %1404 = vpow2.f32 %v1186_v38 }
 0x977   :  { %v1403_v37 = vpop.eup %1402 }
 0x978   :  { %628 = vrot.lane.b32.xlu0 %v1403_v37, %s1496_s2 }
 0x979   :  { %v1405_v39 = vpop.eup %1404 }
 0x97a   :  { %v622_v40 = vadd.f32 1.0, %v1405_v39 }
 0x97c   :  { %1406 = vrcp.f32 %v622_v40 }
 0x989   :  { %v1407_v41 = vpop.eup %1406 }
 0x98a   :  { %v626_v44 = vmul.f32 %v1407_v41, %v534_v29 }
 0x9ea   :  { %v629_v42 = vpop.permute.xlu0 %628 }
 0x9eb   :  { %v631_v43 = vmul.f32 %v1407_v41, %v629_v42 }
 0x9ed   :  { %633 = vrot.lane.b32.xlu1 %v631_v43, %s1496_s2 }
 0xa5f   :  { %v634_v45 = vpop.permute.xlu1 %633 }
 0xa60   :  { %v636_v46 = vadd.f32 %v634_v45, %v626_v44 }
 0xa62   :  { %1408 = vtanh.f32 %v636_v46 }
 0xa6f   :  { %v1409_v47 = vpop.eup %1408 }
 0xa70   :  { %639 = vrot.lane.b32.xlu0 %v1409_v47, %s1496_s2 }
 0xae2   :  { %v640_v48 = vpop.permute.xlu0 %639 }
 0xae3   :  { %v642_v49 = vmul.f32 %v1407_v41, %v640_v48 }
 0xae5   :  { %646 = vrot.lane.b32.xlu1 %v642_v49, %s1497_s11 }
 0xb57   :  { %v647_v50 = vpop.permute.xlu1 %646 }
 0xb58   :  { %1321 = vmatmul.mubr.msk.f32.vlgmr.msra.gmra.mxu0 %vm238_vm4, %v647_v50 }
 0xb59   :  { %1335 = vmatpush3.msra.mxu0 %v1539_v3  ;;  %1342 = vmatprep.mubr.msk.f32.mxu0 %vm1495_vm0, %v1494_v1 }
 0xb5a   :  { %1336 = vmatprep.subr.mxu0 %v1494_v1 }
 0xb5b   :  { %1337 = vmatpush3.msra.mxu0 %v1545_v4 }
 0xb5c   :  { %1338 = vmatprep.subr.mxu0 %v1494_v1 }
 0xb5d   :  { %1339 = vmatpush3.msra.mxu0 %v1554_v7 }
 0xb5e   :  { %1340 = vmatprep.subr.mxu0 %v1494_v1 }
 0xb5f   :  { %1341 = vmatpush3.msra.mxu0 %v1561_v9 }
 0xb60   :  { %1356 = vmatprep.subr.mxu0 %v1494_v1 }
 0xc18   :  { %v716_v51 = vpop.f32.mrf.mxu0 }
 0xc19   :  { %v720_v52 = vadd.f32 %v716_v51, %v1670_v14 }
 0xc1a   :  { %v1322_v53 = vpop.f32.mrf.mxu0 }
 0xc1b   :  { %1410 = vtanh.f32 %v720_v52  ;;  %v1188_v55 = vmul.f32 -1.442695, %v720_v52  ;;  %v1053_v53 = vld [vmem:[%s1766_s3 + $0x10] sm:$0xff] }
 0xc1d   :  { %1412 = vpow2.f32 %v1188_v55  ;;  %v1051_v55 = vld [vmem:[%s1766_s3] sm:$0xff] }
 0xc28   :  { %v1411_v54 = vpop.eup %1410 }
 0xc29   :  { %730 = vrot.lane.b32.xlu0 %v1411_v54, %s1496_s2  ;;  %v1052_v54 = vld [vmem:[%s1766_s3 + $0x8] sm:$0xff] }
 0xc2a   :  { %v1413_v56 = vpop.eup %1412 }
 0xc2b   :  { %v724_v57 = vadd.f32 1.0, %v1413_v56 }
 0xc2d   :  { %1414 = vrcp.f32 %v724_v57 }
 0xc3a   :  { %v1415_v58 = vpop.eup %1414 }
 0xc3b   :  { %v728_v61 = vmul.f32 %v1415_v58, %v636_v46 }
 0xc9b   :  { %v731_v59 = vpop.permute.xlu0 %730 }
 0xc9c   :  { %v733_v60 = vmul.f32 %v1415_v58, %v731_v59 }
 0xc9e   :  { %735 = vrot.lane.b32.xlu1 %v733_v60, %s1496_s2  ;;  %v1195_v60 = vld [vmem:[%s1767_s4] ss:$0 sm:$0xff] }
 0xd10   :  { %v736_v62 = vpop.permute.xlu1 %735 }
 0xd11   :  { %v738_v63 = vadd.f32 %v736_v62, %v728_v61 }
 0xd13   :  { %1416 = vtanh.f32 %v738_v63 }
 0xd20   :  { %v1417_v0 = vpop.eup %1416 }
 0xd21   :  { %741 = vrot.lane.b32.xlu0 %v1417_v0, %s1496_s2 }
 0xd93   :  { %v742_v2 = vpop.permute.xlu0 %741 }
 0xd94   :  { %v744_v5 = vmul.f32 %v1415_v58, %v742_v2 }
 0xd96   :  { %748 = vrot.lane.b32.xlu1 %v744_v5, %s1497_s11 }
 0xe08   :  { %v749_v6 = vpop.permute.xlu1 %748 }
 0xe09   :  { %1332 = vmatmul.mubr.msk.f32.vlgmr.msra.gmra.mxu1 %vm238_vm4, %v749_v6 }
 0xe0a   :  { %1346 = vmatpush3.msra.mxu1 %v1539_v3  ;;  %1353 = vmatprep.mubr.msk.f32.mxu1 %vm1495_vm0, %v1494_v1 }
 0xe0b   :  { %1347 = vmatprep.subr.mxu1 %v1494_v1 }
 0xe0c   :  { %1348 = vmatpush3.msra.mxu1 %v1545_v4 }
 0xe0d   :  { %1349 = vmatprep.subr.mxu1 %v1494_v1 }
 0xe0e   :  { %1350 = vmatpush3.msra.mxu1 %v1554_v7 }
 0xe0f   :  { %1351 = vmatprep.subr.mxu1 %v1494_v1 }
 0xe10   :  { %1352 = vmatpush3.msra.mxu1 %v1561_v9 }
 0xec9   :  { %v818_v8 = vpop.f32.mrf.mxu1 }
 0xeca   :  { %v822_v10 = vadd.f32 %v1668_v13, %v818_v8 }
 0xecb   :  { %v1333_v11 = vpop.f32.mrf.mxu1 }
 0xecc   :  { %1418 = vtanh.f32 %v822_v10  ;;  %v1190_v12 = vmul.f32 -1.442695, %v822_v10 }
 0xece   :  { %1420 = vpow2.f32 %v1190_v12 }
 0xed9   :  { %v1419_v3 = vpop.eup %1418 }
 0xeda   :  { %832 = vrot.lane.b32.xlu0 %v1419_v3, %s1496_s2 }
 0xedb   :  { %v1421_v14 = vpop.eup %1420 }
 0xedc   :  { %v826_v4 = vadd.f32 1.0, %v1421_v14 }
 0xede   :  { %1422 = vrcp.f32 %v826_v4 }
 0xeeb   :  { %v1423_v17 = vpop.eup %1422 }
 0xeec   :  { %v830_v19 = vmul.f32 %v1423_v17, %v738_v63 }
 0xf4c   :  { %v833_v18 = vpop.permute.xlu0 %832 }
 0xf4d   :  { %v835_v7 = vmul.f32 %v1423_v17, %v833_v18 }
 0xf4f   :  { %837 = vrot.lane.b32.xlu1 %v835_v7, %s1496_s2 }
 0xfc1   :  { %v838_v9 = vpop.permute.xlu1 %837 }
 0xfc2   :  { %v840_v20 = vadd.f32 %v838_v9, %v830_v19 }
 0xfc4   :  { %1424 = vtanh.f32 %v840_v20 }
 0xfd1   :  { %v1425_v13 = vpop.eup %1424 }
 0xfd2   :  { %843 = vrot.lane.b32.xlu0 %v1425_v13, %s1496_s2 }
0x1044   :  { %v844_v21 = vpop.permute.xlu0 %843 }
0x1045   :  { %v846_v22 = vmul.f32 %v1423_v17, %v844_v21 }
0x1047   :  { %850 = vrot.lane.b32.xlu1 %v846_v22, %s1497_s11 }
0x10b9   :  { %v851_v23 = vpop.permute.xlu1 %850 }
0x10ba   :  { %1343 = vmatmul.mubr.msk.f32.vlgmr.msra.gmra.mxu0 %vm238_vm4, %v851_v23 }
0x10bb   :  { %1364 = vmatprep.mubr.msk.f32.mxu0 %vm1495_vm0, %v1494_v1 }
0x117a   :  { %v920_v24 = vpop.f32.mrf.mxu0 }
0x117b   :  { %v924_v25 = vadd.f32 %v920_v24, %v1674_v16 }
0x117c   :  { %v1344_v26 = vpop.f32.mrf.mxu0 }
0x117d   :  { %1426 = vtanh.f32 %v924_v25  ;;  %v1192_v28 = vmul.f32 -1.442695, %v924_v25 }
0x117f   :  { %1428 = vpow2.f32 %v1192_v28 }
0x118a   :  { %v1427_v27 = vpop.eup %1426 }
0x118b   :  { %934 = vrot.lane.b32.xlu0 %v1427_v27, %s1496_s2 }
0x118c   :  { %v1429_v29 = vpop.eup %1428 }
0x118d   :  { %v928_v30 = vadd.f32 1.0, %v1429_v29 }
0x118f   :  { %1430 = vrcp.f32 %v928_v30 }
0x119c   :  { %v1431_v31 = vpop.eup %1430 }
0x119d   :  { %v932_v34 = vmul.f32 %v1431_v31, %v840_v20 }
0x11fd   :  { %v935_v32 = vpop.permute.xlu0 %934 }
0x11fe   :  { %v937_v33 = vmul.f32 %v1431_v31, %v935_v32 }
0x1200   :  { %939 = vrot.lane.b32.xlu1 %v937_v33, %s1496_s2 }
0x1272   :  { %v940_v35 = vpop.permute.xlu1 %939 }
0x1273   :  { %v942_v36 = vadd.f32 %v940_v35, %v932_v34 }
0x1275   :  { %1432 = vtanh.f32 %v942_v36 }
0x1282   :  { %v1433_v16 = vpop.eup %1432 }
0x1283   :  { %945 = vrot.lane.b32.xlu0 %v1433_v16, %s1496_s2 }
0x12f5   :  { %v946_v37 = vpop.permute.xlu0 %945 }
0x12f6   :  { %v948_v38 = vmul.f32 %v1431_v31, %v946_v37 }
0x12f8   :  { %952 = vrot.lane.b32.xlu1 %v948_v38, %s1497_s11 }
0x136a   :  { %v953_v39 = vpop.permute.xlu1 %952 }
0x136b   :  { %1354 = vmatmul.mubr.msk.f32.vlgmr.msra.gmra.mxu1 %vm238_vm4, %v953_v39 }
0x142b   :  { %v1022_v40 = vpop.f32.mrf.mxu1 }
0x142c   :  { %v1026_v41 = vadd.f32 %v1672_v15, %v1022_v40  ;;  %v1054_v15 = vld [vmem:[%s1766_s3 + $0x18] sm:$0xff]  ;;  %s1498_s3 = smov [#allocation6]  }
0x142d   :  { %v1355_v42 = vpop.f32.mrf.mxu1  ;;  %1357 = vmatpush3.msra.mxu0 %v1054_v15  ;;  %s1155_s7 = sshll.u32 %s1498_s3, 4  ;;  %s1156_s7 = int_to_ptr.vmem [resolvable:$true] %s1155_s7 }
0x142e   :  { %1434 = vtanh.f32 %v1026_v41  ;;  %v1194_v44 = vmul.f32 -1.442695, %v1026_v41  ;;  %1358 = vmatprep.subr.mxu0 %v1494_v1  ;;  %s1466_s4 = scalar_lea.vmem %s1156_s7, 128  ;;  %p1471_p6 = scmp.lt.s32.totalorder %s1156_s7, %s1156_s7 }
0x142f   :  { %1359 = vmatpush3.msra.mxu0 %v1053_v53  ;;  %p1467_p5 = scmp.ne.s32.totalorder %s1156_s7, %s1466_s4  ;;  %p1472_p7 = scmp.lt.s32.totalorder %s1466_s4, %s1466_s4 }
0x1430   :  { %1436 = vpow2.f32 %v1194_v44  ;;  %1360 = vmatprep.subr.mxu0 %v1494_v1 }
0x1431   :  { %1361 = vmatpush3.msra.mxu0 %v1052_v54  ;;  %p1473_p8 = por %p1472_p7, %p1471_p6 }
0x1432   :  { %1362 = vmatprep.subr.mxu0 %v1494_v1 }
0x1433   :  { %1363 = vmatpush3.msra.mxu0 %v1051_v55  ;;  %p1474_p9 = pnand %p1473_p8, %p1467_p5 }
0x143b   :  { %v1435_v43 = vpop.eup %1434 }
0x143c   :  { %1036 = vrot.lane.b32.xlu0 %v1435_v43, %s1496_s2 }
0x143d   :  { %v1437_v45 = vpop.eup %1436 }
0x143e   :  { %v1030_v46 = vadd.f32 1.0, %v1437_v45 }
0x1440   :  { %1438 = vrcp.f32 %v1030_v46 }
0x144d   :  { %v1439_v47 = vpop.eup %1438 }
0x144e   :  { %v1034_v50 = vmul.f32 %v1439_v47, %v942_v36 }
0x14ae   :  { %v1037_v48 = vpop.permute.xlu0 %1036 }
0x14af   :  { %v1039_v49 = vmul.f32 %v1439_v47, %v1037_v48 }
0x14b1   :  { %1041 = vrot.lane.b32.xlu1 %v1039_v49, %s1496_s2 }
0x1523   :  { %v1042_v51 = vpop.permute.xlu1 %1041 }
0x1524   :  { %v1044_v52 = vadd.f32 %v1042_v51, %v1034_v50 }
0x1526   :  { %1440 = vtanh.f32 %v1044_v52 }
0x1533   :  { %v1441_v56 = vpop.eup %1440 }
0x1534   :  { %1047 = vrot.lane.b32.xlu0 %v1441_v56, %s1496_s2 }
0x15a6   :  { %v1048_v57 = vpop.permute.xlu0 %1047 }
0x15a7   :  { %v1050_v58 = vmul.f32 %v1439_v47, %v1048_v57 }
0x15a9   :  { %1063 = vrot.lane.b32.xlu1 %v1050_v58, %s1497_s11 }
0x161b   :  { %v1064_v59 = vpop.permute.xlu1 %1063 }
0x161c   :  { %1365 = vmatmul.mubr.msk.f32.vlgmr.msra.gmra.mxu0 %vm238_vm4, %v1064_v59 }
0x16dc   :  { %v1133_v61 = vpop.f32.mrf.mxu0 }
0x16dd   :  { %v1134_v62 = vadd.f32 %v1195_v60, %v1133_v61 }
0x16de   :  { %v1366_v63 = vpop.f32.mrf.mxu0 }
0x16df   :  { %1137 = vmax.xlane.f32.xlu0 %v1134_v62 }
0x1768   :  { %v1138_v1 = vpop.xlane.xlu0 %1137 }
0x1769   :  { %v1139_v0 = vsub.f32 %v1134_v62, %v1138_v1 }
0x176b   :  { %v1140_v2 = vmul.f32 1.442695, %v1139_v0 }
0x176d   :  { %1442 = vpow2.f32 %v1140_v2 }
0x177a   :  { %v1443_v5 = vpop.eup %1442 }
0x177b   :  { %1142 = vadd.xlane.f32.xlu1 %v1443_v5 }
0x1804   :  { %v1143_v6 = vpop.xlane.xlu1 %1142 }
0x1805   :  { %1444 = vlog2.f32 %v1143_v6 }
0x1812   :  { %v1445_v8 = vpop.eup %1444 }
0x1813   :  { %v1145_v10 = vmul.f32 0.6931472, %v1445_v8 }
0x1815   :  { %v1146_v11 = vadd.f32 %v1145_v10, %v1138_v1 }
0x1817   :  { %v1147_v3 = vsub.f32 %v1134_v62, %v1146_v11 }
0x1819   :  { %1148 = vst [vmem:[#allocation6] sm:$0xff] %v1147_v3 }
0x181a   :  { %1477 = shalt.err (!%p1474_p9)
}
0x181b   :  { %1158 = dma.vmem_to_hbm [thread:$0]  %s1156_s7, 128, %s1768_s5, [#allocation5]  }
0x181c   :  { %1488 = dma.done.wait [#allocation5], 128  }
0x181d   :  { %1489 = vsyncadd [#allocation5], 4294967168 }
0x181e   :  { %1162 = vsyncpa [#allocation4], 1 }
0x181f   :  { %1163 = vsyncpa [#allocation5], 1 }

</bundles_post_ra>
